<compile_context>
chip_gen: v7x
topology: tpu7x:2x2x1
jax: 0.10.0
libtpu: 0.0.40
codegen_flags: <defaults>
</compile_context>

<pallas_src>
import functools

import jax
import jax.numpy as jnp
from jax import lax
from jax.experimental import pallas as pl
from jax.experimental.pallas import tpu as pltpu


_OUT_TILE_BYTES = 2 * 1024 * 1024       # target f32 bytes per output block
_SMALL_CANVAS_BYTES = 2 * 1024 * 1024   # whole (s, s) canvas below this -> small path
_VMEM_LIMIT_BYTES = 32 * 1024 * 1024    # 2x in + 2x out + scratch, safe on v5e/v6e/v7x


def _round_up(x, m):
    return -(-x // m) * m


def _sublane(dtype):
    # Minimum second-to-last-dim granule for the input dtype (f32:8, bf16:16, int8:32).
    return {1: 32, 2: 16}.get(jnp.dtype(dtype).itemsize, 8)


# ------------------------------ small-canvas path -----------------------------------


def _small_kernel(img_ref, out_ref, *, pad_code, new_y, new_x, H, W, s):
    img = img_ref[...].astype(jnp.float32)             # (CB, H, W), cast in-kernel
    if H == s and W == s:
        out_ref[...] = img
    else:
        out_ref[...] = jnp.full(out_ref.shape, jnp.float32(pad_code), jnp.float32)
        out_ref[:, new_y:new_y + H, new_x:new_x + W] = img


def _pad_square_small(img, pad_code, s, new_y, new_x):
    C, H, W = img.shape
    # Channels per grid step, budgeted on the (8,128)-padded canvas footprint so the
    # (CB, s, s) f32 block stays <= ~_OUT_TILE_BYTES even for lane-sparse tiny s.
    padded_canvas = _round_up(s, 8) * _round_up(s, 128) * 4
    cap = min(C, max(1, _OUT_TILE_BYTES // padded_canvas))
    cb = next(d for d in range(cap, 0, -1) if C % d == 0)
    kernel = functools.partial(_small_kernel, pad_code=pad_code, new_y=new_y,
                               new_x=new_x, H=H, W=W, s=s)
    return pl.pallas_call(
        kernel,
        out_shape=jax.ShapeDtypeStruct((C, s, s), jnp.float32),
        grid=(C // cb,),
        in_specs=[pl.BlockSpec((cb, H, W), lambda g: (g, 0, 0))],
        out_specs=pl.BlockSpec((cb, s, s), lambda g: (g, 0, 0)),
        compiler_params=pltpu.CompilerParams(
            dimension_semantics=("parallel",),
            vmem_limit_bytes=_VMEM_LIMIT_BYTES),
    )(img)


# ------------------------------- tiled (large) path ----------------------------------


def _portrait_kernel(b_ref, out_ref, *, pad_code, new_x, W, s, TH):
    # H == s: input rows align 1:1 with the output block; only lane placement is needed.
    # Garbage rows from the ragged last input block land in output rows that are not
    # written back, so no row mask is needed.
    pad = jnp.float32(pad_code)
    window = b_ref[0].astype(jnp.float32)               # (TH, W)
    pieces = []
    if new_x > 0:
        pieces.append(jnp.full((TH, new_x), pad, jnp.float32))
    pieces.append(window)
    right = s - W - new_x
    if right > 0:
        pieces.append(jnp.full((TH, right), pad, jnp.float32))
    tile = jnp.concatenate(pieces, axis=1) if len(pieces) > 1 else pieces[0]
    out_ref[0] = tile                                    # single full-lane-width store


def _row_valid(new_y, valid_h, TH):
    # (TH, 1) mask, broadcast through jnp.where (no full (TH, s) iota/compare temporary).
    row0 = pl.program_id(1) * TH - new_y
    rows = row0 + lax.broadcasted_iota(jnp.int32, (TH, 1), 0)
    return (rows >= 0) & (rows < valid_h)


def _landscape_aligned_kernel(b_ref, out_ref, *, pad_code, new_y, valid_h, TH):
    # W == s and new_y % TH == 0: input row blocks line up with output row blocks.
    pad = jnp.float32(pad_code)
    out_ref[0] = jnp.where(_row_valid(new_y, valid_h, TH),
                           b_ref[0].astype(jnp.float32), pad)


def _landscape_carry_kernel(b_ref, out_ref, carry_ref, *, pad_code, new_y, valid_h,
                            TH, rem):
    # W == s, new_y % TH == rem != 0: this output row block needs the last `rem` rows of
    # the previous input row block plus the first TH - rem rows of the current one.  The
    # previous block's tail is carried in VMEM scratch across the (sequential) row axis,
    # so every input row is DMA'd from HBM exactly once (no 2x re-read).
    pad = jnp.float32(pad_code)
    prev = carry_ref[0:rem, :]                           # tail of previous input block
    cur = b_ref[0, 0:TH - rem, :]
    window = jnp.concatenate([prev, cur], axis=0)        # (TH, W), native input dtype
    carry_ref[0:rem, :] = b_ref[0, TH - rem:TH, :]       # save tail for next row block
    out_ref[0] = jnp.where(_row_valid(new_y, valid_h, TH),
                           window.astype(jnp.float32), pad)


def _pad_square_tiled(img, pad_code, s, new_y, new_x, valid_h, TH):
    """Tiled path: grid=(C, cdiv(s, TH)), output blocks (1, TH, s).  `img` may carry a
    few padded bottom rows (skinny-landscape case); `valid_h` is the real image height."""
    C, H_arr, W = img.shape
    n_rb = pl.cdiv(s, TH)
    out_shape = jax.ShapeDtypeStruct((C, s, s), jnp.float32)
    out_spec = pl.BlockSpec((1, TH, s), lambda c, r: (c, r, 0))

    def params(sem):
        return pltpu.CompilerParams(dimension_semantics=sem,
                                    vmem_limit_bytes=_VMEM_LIMIT_BYTES)

    if valid_h == s:
        # Portrait / square: only a lane shift (new_x); rows already aligned.
        kernel = functools.partial(_portrait_kernel, pad_code=pad_code, new_x=new_x,
                                   W=W, s=s, TH=TH)
        return pl.pallas_call(
            kernel, out_shape=out_shape, grid=(C, n_rb),
            in_specs=[pl.BlockSpec((1, TH, W), lambda c, r: (c, r, 0))],
            out_specs=out_spec,
            compiler_params=params(("parallel", "parallel")),
        )(img)

    # Landscape: W == s, new_x == 0; shift rows down by new_y.
    nib = pl.cdiv(H_arr, TH)
    qb, rem = divmod(new_y, TH)

    def b_map(c, r):
        # Clipped index: pad-only row blocks reuse the previous block index, so Pallas
        # skips the re-DMA and each input row is read from HBM exactly once per channel.
        return (c, jnp.clip(r - qb, 0, nib - 1), 0)

    in_spec = pl.BlockSpec((1, TH, W), b_map)

    if rem == 0:
        kernel = functools.partial(_landscape_aligned_kernel, pad_code=pad_code,
                                   new_y=new_y, valid_h=valid_h, TH=TH)
        return pl.pallas_call(
            kernel, out_shape=out_shape, grid=(C, n_rb),
            in_specs=[in_spec], out_specs=out_spec,
            compiler_params=params(("parallel", "parallel")),
        )(img)

    # TODO(synk): when C == 1 and new_y has no sublane-aligned divisor, the carry forces
    # the row axis to "arbitrary", so on v7x only one of the two TensorCores is used.
    kernel = functools.partial(_landscape_carry_kernel, pad_code=pad_code, new_y=new_y,
                               valid_h=valid_h, TH=TH, rem=rem)
    return pl.pallas_call(
        kernel, out_shape=out_shape, grid=(C, n_rb),
        in_specs=[in_spec], out_specs=out_spec,
        scratch_shapes=[pltpu.VMEM((TH, W), img.dtype)],
        compiler_params=params(("parallel", "arbitrary")),
    )(img)


def _pick_row_tile(s, h_cap, dtype):
    """Largest TH (multiple of the dtype's sublane granule) whose (TH, s) f32 output
    block is <= _OUT_TILE_BYTES, capped so input row blocks never exceed h_cap rows."""
    sub = _sublane(dtype)
    th = (_OUT_TILE_BYTES // (4 * s)) // sub * sub
    th = min(th, (h_cap // sub) * sub)
    return max(sub, th)


# ------------------------------------ wrapper ----------------------------------------


def pad_square(img, pad_code=0):
    if not isinstance(pad_code, int):
        raise TypeError(
            f"In PadSquare, type(pad_code) should be int, but got {type(pad_code)}")
    if img.ndim != 3:
        raise ValueError(f"PadSquare expects (C, H, W) input, got shape {img.shape}")
    C, H, W = img.shape
    s = max(H, W)
    new_y = (s - H) // 2
    new_x = (s - W) // 2

    if s * s * 4 <= _SMALL_CANVAS_BYTES:
        return _pad_square_small(img, pad_code, s, new_y, new_x)

    sub = _sublane(img.dtype)
    if H < s and H < sub:
        # Ultra-skinny landscape: pad a few bottom rows (host side, tiny) so the tiled
        # input row blocks never exceed the array; pad rows are masked out in-kernel.
        img = jnp.pad(img, ((0, 0), (0, sub - H), (0, 0)))

    TH = _pick_row_tile(s, img.shape[1], img.dtype)
    if C == 1 and H < s and new_y > 0 and new_y % TH != 0 and new_y % sub == 0:
        # v7x: with one channel the carry variant would serialize on a single TensorCore;
        # if new_y has a sublane-aligned divisor, shrink TH so new_y % TH == 0 and the
        # fully parallel aligned kernel applies instead.
        best = sub
        k = sub
        while k <= TH and k <= new_y:
            if new_y % k == 0:
                best = k
            k += sub
        TH = best

    return _pad_square_tiled(img, pad_code, s, new_y, new_x, H, TH)


# -------------------------------------- demo -----------------------------------------

if __name__ == "__main__":
    def ref_pad_square(im, pad_code=0):
        c, h, w = im.shape
        ss = max(h, w)
        ny, nx = (ss - h) // 2, (ss - w) // 2
        out = jnp.full((c, ss, ss), float(pad_code), jnp.float32)
        return out.at[:, ny:ny + h, nx:nx + w].set(im.astype(jnp.float32))

    def check(got, want):
        return bool(got.shape == want.shape and got.dtype == want.dtype
                    and jnp.allclose(got, want))

    keys = jax.random.split(jax.random.PRNGKey(0), 8)
    ok = True

    # Small-canvas path (channel-grouped whole-canvas kernel).
    small_cases = [
        jax.random.normal(keys[0], (4, 10, 16), jnp.float32),   # landscape
        jax.random.normal(keys[1], (4, 16, 10), jnp.float32),   # portrait
        jax.random.normal(keys[2], (2, 7, 9), jnp.float32),     # awkward size
        jax.random.normal(keys[3], (3, 16, 16), jnp.float32),   # already square
    ]
    for im in small_cases:
        out = jax.block_until_ready(pad_square(im, pad_code=0))
        ok = ok and check(out, ref_pad_square(im, 0))
    out7 = jax.block_until_ready(pad_square(small_cases[0], pad_code=7))
    ok = ok and check(out7, ref_pad_square(small_cases[0], 7))

    # Tiled (large-image) kernels, exercised at small sizes by forcing TH = 16:
    #   (2, 40, 90): landscape, new_y % TH != 0 -> carry kernel (ragged last row block)
    #   (2, 56, 88): landscape, new_y % TH == 0 -> aligned kernel (ragged)
    #   (2, 90, 40): portrait                   -> lane-placement kernel (ragged)
    tiled_cases = [
        (jax.random.normal(keys[4], (2, 40, 90), jnp.float32), 0),
        (jax.random.normal(keys[5], (2, 56, 88), jnp.float32), 0),
        (jax.random.normal(keys[6], (2, 90, 40), jnp.float32), 0),
        (jax.random.normal(keys[4], (2, 40, 90), jnp.float32), 3),
    ]
    for im, pc in tiled_cases:
        c, h, w = im.shape
        ss = max(h, w)
        ny, nx = (ss - h) // 2, (ss - w) // 2
        out = jax.block_until_ready(_pad_square_tiled(im, pc, ss, ny, nx, h, 16))
        ok = ok and check(out, ref_pad_square(im, pc))

    # One moderate end-to-end case that takes the tiled carry path through the wrapper.
    big = jax.random.normal(keys[7], (2, 500, 800), jnp.float32)
    out = jax.block_until_ready(pad_square(big, pad_code=1))
    ok = ok and check(out, ref_pad_square(big, 1))

    assert ok, "PadSquare Pallas kernel mismatch vs reference"
    print("KERNEL_OK")
</pallas_src>

<mosaic_0001>
module attributes {stable_mosaic.version = 11 : i64} {
  func.func @_small_kernel(%arg0: i32, %arg1: memref<4x10x16xf32, #tpu.memory_space<vmem>>, %arg2: memref<4x16x16xf32, #tpu.memory_space<vmem>>) attributes {dimension_semantics = [#tpu.dimension_semantics<parallel>], iteration_bounds = array<i64: 1>, scalar_prefetch = 0 : i64, scratch_operands = 0 : i64, tpu.core_type = #tpu.core_type<tc>, window_params = [{transform_indices = @transform_0, window_bounds = array<i64: 4, 10, 16>}, {transform_indices = @transform_1, window_bounds = array<i64: 4, 16, 16>}]} {
    %c0 = arith.constant 0 : index
    %c0_0 = arith.constant 0 : index
    %c0_1 = arith.constant 0 : index
    %0 = vector.load %arg1[%c0, %c0_0, %c0_1] : memref<4x10x16xf32, #tpu.memory_space<vmem>>, vector<4x10x16xf32>
    %cst = arith.constant 0.000000e+00 : f32
    %1 = vector.broadcast %cst : f32 to vector<4x16x16xf32>
    %c0_2 = arith.constant 0 : index
    %c0_3 = arith.constant 0 : index
    %c0_4 = arith.constant 0 : index
    %2 = vector.load %arg2[%c0_2, %c0_3, %c0_4] : memref<4x16x16xf32, #tpu.memory_space<vmem>>, vector<4x16x16xf32>
    tpu.vector_store %arg2[%c0_2, %c0_3, %c0_4], %1 {strides = array<i32>} : memref<4x16x16xf32, #tpu.memory_space<vmem>>, vector<4x16x16xf32>,
    %c0_5 = arith.constant 0 : index
    %c3 = arith.constant 3 : index
    %c0_6 = arith.constant 0 : index
    %3 = vector.load %arg2[%c0_5, %c3, %c0_6] : memref<4x16x16xf32, #tpu.memory_space<vmem>>, vector<4x10x16xf32>
    tpu.vector_store %arg2[%c0_5, %c3, %c0_6], %0 {strides = array<i32>} : memref<4x16x16xf32, #tpu.memory_space<vmem>>, vector<4x10x16xf32>,
    return
  }
  func.func @transform_0(%arg0: i32) -> (i32, i32, i32) {
    %c0_i32 = arith.constant 0 : i32
    %c0_i32_0 = arith.constant 0 : i32
    %c0_i32_1 = arith.constant 0 : i32
    return %arg0, %c0_i32, %c0_i32_0 : i32, i32, i32
  }
  func.func @transform_1(%arg0: i32) -> (i32, i32, i32) {
    %c0_i32 = arith.constant 0 : i32
    %c0_i32_0 = arith.constant 0 : i32
    %c0_i32_1 = arith.constant 0 : i32
    return %arg0, %c0_i32, %c0_i32_0 : i32, i32, i32
  }
}

</mosaic_0001>

<bundles_post_ra>
// kernel: tpu_custom_call.1
= control target key start
LH: loop header
LB: loop body
LE: loop exit
PB: predicated region body
PF: predicated region fallthrough
CT: control target
= control target key end

     0   :  { %vm17_vm0 = vcmask 130048   ;;  %vm27_vm1 = vcmask 123904   ;;  %v79_v2 = vmov 0.0   ;;  %s80_s22 = smov [#allocation2]   ;;  %s145_s0 = inlined_call_operand.vmem [shape: f32[4,10,16], index: 0, kind: input, shape index: {}]   ;;  %s146_s1 = inlined_call_operand.hbm [shape: f32[4,16,16], index: 1, kind: output, shape index: {}]  }
   0x1   :  { %v9_v0 = vld [vmem:[%s145_s0] sm:$0xff]  ;;  %v10_v1 = vld [vmem:[%s145_s0 + $0x8] sm:$0x3]  ;;  %18 = vst.msk [vmem:[#allocation2] sm:$0xff] %vm17_vm0, %v79_v2  ;;  %19 = vst.msk [vmem:[#allocation2 + $0x8] sm:$0xff] %vm17_vm0, %v79_v2  ;;  %s40_s23 = sshll.u32 %s80_s22, 4  ;;  %s41_s23 = int_to_ptr.vmem [resolvable:$true] %s40_s23 }
   0x2   :  { %20 = vst.msk [vmem:[#allocation2 + $0x10] sm:$0xff] %vm17_vm0, %v79_v2  ;;  %21 = vst.msk [vmem:[#allocation2 + $0x18] sm:$0xff] %vm17_vm0, %v79_v2  ;;  %v11_v3 = vld [vmem:[%s145_s0 + $0x10] sm:$0xff]  ;;  %v12_v4 = vld [vmem:[%s145_s0 + $0x18] sm:$0x3] }
   0x3   :  { %22 = vst.msk [vmem:[#allocation2 + $0x20] sm:$0xff] %vm17_vm0, %v79_v2  ;;  %23 = vst.msk [vmem:[#allocation2 + $0x28] sm:$0xff] %vm17_vm0, %v79_v2  ;;  %v13_v5 = vld [vmem:[%s145_s0 + $0x20] sm:$0xff]  ;;  %v14_v6 = vld [vmem:[%s145_s0 + $0x28] sm:$0x3] }
   0x4   :  { %24 = vst.msk [vmem:[#allocation2 + $0x30] sm:$0xff] %vm17_vm0, %v79_v2  ;;  %25 = vst.msk [vmem:[#allocation2 + $0x38] sm:$0xff] %vm17_vm0, %v79_v2  ;;  %v15_v7 = vld [vmem:[%s145_s0 + $0x30] sm:$0xff]  ;;  %v16_v8 = vld [vmem:[%s145_s0 + $0x38] sm:$0x3] }
   0x5   :  { %26 = vst.msk [vmem:[#allocation2 + $0x3] sm:$0xff] %vm17_vm0, %v9_v0  ;;  %29 = vst.msk [vmem:[#allocation2 + $0x13] sm:$0xff] %vm17_vm0, %v11_v3 }
   0x6   :  { %28 = vst.msk [vmem:[#allocation2 + $0xb] sm:$0x3] %vm27_vm1, %v10_v1  ;;  %30 = vst.msk [vmem:[#allocation2 + $0x1b] sm:$0x3] %vm27_vm1, %v12_v4 }
   0x7   :  { %31 = vst.msk [vmem:[#allocation2 + $0x23] sm:$0xff] %vm17_vm0, %v13_v5  ;;  %33 = vst.msk [vmem:[#allocation2 + $0x33] sm:$0xff] %vm17_vm0, %v15_v7 }
   0x8   :  { %32 = vst.msk [vmem:[#allocation2 + $0x2b] sm:$0x3] %vm27_vm1, %v14_v6  ;;  %34 = vst.msk [vmem:[#allocation2 + $0x3b] sm:$0x3] %vm27_vm1, %v16_v8 }
   0x9   :  { %6 = vsyncpa [#allocation3], 0  ;;  %s55_s24 = scalar_lea.vmem %s41_s23, 1024  ;;  %p60_p1 = scmp.lt.s32.totalorder %s41_s23, %s41_s23 }
   0xa   :  { %p56_p0 = scmp.ne.s32.totalorder %s41_s23, %s55_s24  ;;  %p61_p2 = scmp.lt.s32.totalorder %s55_s24, %s55_s24 }
   0xc   :  { %p62_p3 = por %p61_p2, %p60_p1 }
   0xe   :  { %p63_p4 = pnand %p62_p3, %p56_p0 }
  0x10   :  { %66 = shalt.err (!%p63_p4)
}
  0x11   :  { %s67_s0 = scalar_lea.hbm %s146_s1, 1024 }
  0x12   :  { %p68_p5 = scmp.ne.s32.totalorder %s146_s1, %s67_s0  ;;  %p71_p6 = scmp.lt.u32.totalorder %s67_s0, %s146_s1 }
  0x14   :  { %p73_p7 = pnand %p71_p6, %p68_p5 }
  0x16   :  { %76 = shalt.err (!%p73_p7)
}
  0x17   :  { %s81_s2 = smov 128   ;;  %s82_s3 = smov 8  }
  0x18   :  { %46 = dma.vmem_to_hbm [thread:$0]  %s41_s23, 1024, %s146_s1, [#allocation3], %s81_s2, %s81_s2, %s82_s3  }
  0x19   :  { %77 = dma.done.wait [#allocation3], 1024  }
  0x1a   :  { %78 = vsyncadd [#allocation3], 4294966272 }
  0x1b   :  { %50 = vsyncpa [#allocation3], 1 }

</bundles_post_ra>
